<compile_context>
chip_gen: v7x
topology: tpu7x:2x2x1
jax: 0.10.0
libtpu: 0.0.40
codegen_flags: <defaults>
</compile_context>

<pallas_src>
import math
import numpy as np
import jax
import jax.numpy as jnp
from jax.experimental import pallas as pl
from jax.experimental.pallas import tpu as pltpu


def _focus_mm_kernel(x_ref, w_ref, b_ref, o_ref):
    # x_ref: (tm, Kp) packed activations; w_ref: (Kp, Np) block-diag folded
    # conv*BN weight (f32); b_ref: (1, Np) folded bias (f32); o_ref: (tm, Np).
    acc = jnp.dot(x_ref[...], w_ref[...], preferred_element_type=jnp.float32)
    acc = acc + b_ref[...]
    # SiLU: exp on EUP, approx reciprocal on EUP -> VALU slot stays free.
    y = acc * pl.reciprocal(1.0 + jnp.exp(-acc), approx=True)
    o_ref[...] = y.astype(o_ref.dtype)


def _round_up(a, b):
    return ((a + b - 1) // b) * b


def _pick_pack_factor(c2, m):
    """Smallest p with (p*c2) % 128 == 0, if it cleanly divides M."""
    if c2 % 128 == 0:
        return 1
    p = 128 // math.gcd(c2, 128)
    if p <= 16 and m % p == 0:
        return p
    return 1  # fall back: correct, but masked stores on the last lanes


def _pick_tile_rows(m_rows, dbuf_row_bytes):
    """Pick the M-tile (packed rows) from a VMEM budget; prefer a divisor of
    m_rows so no padding copy is needed."""
    tile_budget = 24 * 1024 * 1024          # double-buffered in+out tiles
    tm_target = max(8, min(8192, tile_budget // max(dbuf_row_bytes, 1)))
    if m_rows <= tm_target:
        return m_rows                        # single full-dim tile
    d = (tm_target // 8) * 8
    while d >= 8:
        if m_rows % d == 0:
            return d                         # exact divisor, multiple of 8
        d -= 8
    return (tm_target // 8) * 8              # ragged: padding fallback


def focus_forward(x, conv_w, bn_gamma, bn_beta, bn_mean, bn_var, eps=1e-5,
                  nchw_output=True):
    """Focus forward: space-to-depth -> 1x1 conv (no bias) -> BN(eval) -> SiLU.

    x:       (B, C, H, W) NCHW
    conv_w:  (c2, 4*C, 1, 1)
    bn_*:    (c2,)
    returns: (B, c2, H/2, W/2) NCHW (default) or (B, H/2, W/2, c2) NHWC if
             nchw_output=False (saves one full HBM pass over the output).
    """
    B, C, H, W = x.shape
    c2 = conv_w.shape[0]
    K = 4 * C
    Hh, Wh = H // 2, W // 2
    M = B * Hh * Wh

    # ---- space-to-depth (matches torch.cat channel order exactly) ----
    x0 = x[:, :, 0::2, 0::2]
    x1 = x[:, :, 1::2, 0::2]
    x2 = x[:, :, 0::2, 1::2]
    x3 = x[:, :, 1::2, 1::2]
    xsd = jnp.concatenate([x0, x1, x2, x3], axis=1)           # (B, 4C, Hh, Wh)
    xm = jnp.transpose(xsd, (0, 2, 3, 1)).reshape(M, K)       # (M, 4C)

    # ---- fold 1x1 conv + BN (inference) into one f32 weight / bias ----
    scale = (bn_gamma.astype(jnp.float32)
             / jnp.sqrt(bn_var.astype(jnp.float32) + eps))                # (c2,)
    w2d = conv_w.reshape(c2, K).astype(jnp.float32)
    w_fold = (w2d * scale[:, None]).T                                     # (K, c2) f32
    b_fold = (bn_beta.astype(jnp.float32)
              - bn_mean.astype(jnp.float32) * scale).reshape(1, c2)       # (1, c2) f32

    # ---- lane packing: (M, K) -> (M/p, p*K); weight -> block-diag (p*K, p*c2)
    p = _pick_pack_factor(c2, M)
    Kp, Np = p * K, p * c2
    m_rows = M // p
    xp = xm.reshape(m_rows, Kp)                               # contiguous, free
    if p > 1:
        w_pack = jnp.kron(jnp.eye(p, dtype=jnp.float32), w_fold)   # (Kp, Np)
        b_pack = jnp.tile(b_fold, (1, p))                           # (1, Np)
    else:
        w_pack, b_pack = w_fold, b_fold

    out_dtype = x.dtype
    dbuf_row_bytes = 2 * (_round_up(Kp, 128) * jnp.dtype(xp.dtype).itemsize
                          + _round_up(Np, 128) * jnp.dtype(out_dtype).itemsize)
    tm = _pick_tile_rows(m_rows, dbuf_row_bytes)
    grid_m = pl.cdiv(m_rows, tm)
    rows_pad = grid_m * tm
    if rows_pad != m_rows:
        # Padding fallback only when no clean divisor exists.
        xp = jnp.pad(xp, ((0, rows_pad - m_rows), (0, 0)))

    # Scoped VMEM: raise above v5e's 16 MiB default, stay under v7x's 64 MiB.
    vmem_need = tm * dbuf_row_bytes + 4 * 1024 * 1024
    vmem_limit = int(min(48 * 1024 * 1024, max(32 * 1024 * 1024, vmem_need)))

    yp = pl.pallas_call(
        _focus_mm_kernel,
        out_shape=jax.ShapeDtypeStruct((rows_pad, Np), out_dtype),
        grid_spec=pltpu.PrefetchScalarGridSpec(
            num_scalar_prefetch=0,
            grid=(grid_m,),
            in_specs=[
                pl.BlockSpec((tm, Kp), lambda i: (i, 0)),   # packed activations
                pl.BlockSpec((Kp, Np), lambda i: (0, 0)),   # block-diag weight
                pl.BlockSpec((1, Np), lambda i: (0, 0)),    # folded bias
            ],
            out_specs=pl.BlockSpec((tm, Np), lambda i: (i, 0)),
        ),
        compiler_params=pltpu.CompilerParams(
            dimension_semantics=("parallel",),
            vmem_limit_bytes=vmem_limit),
    )(xp, w_pack, b_pack)

    if rows_pad != m_rows:
        yp = yp[:m_rows]
    y = yp.reshape(M, c2).reshape(B, Hh, Wh, c2)              # NHWC (free unpack)
    if nchw_output:
        y = jnp.transpose(y, (0, 3, 1, 2))                    # NCHW to match torch
    return y


def reference_focus(x, conv_w, bn_gamma, bn_beta, bn_mean, bn_var, eps=1e-5):
    x0 = x[:, :, 0::2, 0::2]
    x1 = x[:, :, 1::2, 0::2]
    x2 = x[:, :, 0::2, 1::2]
    x3 = x[:, :, 1::2, 1::2]
    xc = jnp.concatenate([x0, x1, x2, x3], axis=1)
    w2d = conv_w.reshape(conv_w.shape[0], -1)
    y = jnp.einsum('bkhw,ck->bchw', xc.astype(jnp.float32),
                   w2d.astype(jnp.float32),
                   precision=jax.lax.Precision.HIGHEST)
    scale = bn_gamma / jnp.sqrt(bn_var + eps)
    bias = bn_beta - bn_mean * scale
    y = y * scale[None, :, None, None] + bias[None, :, None, None]
    return (y * jax.nn.sigmoid(y)).astype(x.dtype)


if __name__ == "__main__":
    key = jax.random.PRNGKey(0)
    B, c1, H, W = 2, 4, 16, 16
    c2 = 32
    k_x, k_w, k_g, k_b, k_m, k_v = jax.random.split(key, 6)

    x = jax.random.normal(k_x, (B, c1, H, W), dtype=jnp.float32)
    conv_w = 0.1 * jax.random.normal(k_w, (c2, 4 * c1, 1, 1), dtype=jnp.float32)
    bn_gamma = 1.0 + 0.1 * jax.random.normal(k_g, (c2,), dtype=jnp.float32)
    bn_beta = 0.1 * jax.random.normal(k_b, (c2,), dtype=jnp.float32)
    bn_mean = 0.1 * jax.random.normal(k_m, (c2,), dtype=jnp.float32)
    bn_var = jnp.abs(jax.random.normal(k_v, (c2,), dtype=jnp.float32)) + 0.5

    out = focus_forward(x, conv_w, bn_gamma, bn_beta, bn_mean, bn_var)
    out = jax.block_until_ready(out)
    ref = reference_focus(x, conv_w, bn_gamma, bn_beta, bn_mean, bn_var)

    if out.shape == ref.shape and np.allclose(np.asarray(out), np.asarray(ref),
                                              rtol=1e-2, atol=1e-2):
        print("KERNEL_OK")
    else:
        err = float(np.max(np.abs(np.asarray(out) - np.asarray(ref))))
        print("KERNEL_MISMATCH max_abs_err=%g" % err)
</pallas_src>

<mosaic_0001>
module attributes {stable_mosaic.version = 11 : i64} {
  func.func @_focus_mm_kernel(%arg0: i32, %arg1: memref<32x64xf32, #tpu.memory_space<vmem>>, %arg2: memref<64x128xf32, #tpu.memory_space<vmem>>, %arg3: memref<1x128xf32, #tpu.memory_space<vmem>>, %arg4: memref<32x128xf32, #tpu.memory_space<vmem>>) attributes {dimension_semantics = [#tpu.dimension_semantics<parallel>], iteration_bounds = array<i64: 1>, scalar_prefetch = 0 : i64, scratch_operands = 0 : i64, tpu.core_type = #tpu.core_type<tc>, window_params = [{transform_indices = @transform_0, window_bounds = array<i64: 32, 64>}, {pipeline_mode = #tpu.pipeline_mode<synchronous>, transform_indices = @transform_1, window_bounds = array<i64: 64, 128>}, {pipeline_mode = #tpu.pipeline_mode<synchronous>, transform_indices = @transform_2, window_bounds = array<i64: 1, 128>}, {transform_indices = @transform_3, window_bounds = array<i64: 32, 128>}]} {
    %c0 = arith.constant 0 : index
    %c0_0 = arith.constant 0 : index
    %0 = vector.load %arg1[%c0, %c0_0] : memref<32x64xf32, #tpu.memory_space<vmem>>, vector<32x64xf32>
    %c0_1 = arith.constant 0 : index
    %c0_2 = arith.constant 0 : index
    %1 = vector.load %arg2[%c0_1, %c0_2] : memref<64x128xf32, #tpu.memory_space<vmem>>, vector<64x128xf32>
    %cst = arith.constant dense<0.000000e+00> : vector<32x128xf32>
    %2 = tpu.matmul %0, %1, %cst {dimension_numbers = #tpu.dot_dimension_numbers<[1], [0], [0], [1], [0, 0, 1, 1], [], []>} : vector<32x64xf32>, vector<64x128xf32>, vector<32x128xf32> -> vector<32x128xf32>
    %c0_3 = arith.constant 0 : index
    %c0_4 = arith.constant 0 : index
    %3 = vector.load %arg3[%c0_3, %c0_4] : memref<1x128xf32, #tpu.memory_space<vmem>>, vector<1x128xf32>
    %4 = vector.broadcast %3 : vector<1x128xf32> to vector<32x128xf32>
    %5 = arith.addf %2, %4 : vector<32x128xf32>
    %cst_5 = arith.constant 0.000000e+00 : f32
    %6 = vector.broadcast %cst_5 : f32 to vector<32x128xf32>
    %7 = arith.subf %6, %5 : vector<32x128xf32>
    %8 = math.exp %7 : vector<32x128xf32>
    %cst_6 = arith.constant 1.000000e+00 : f32
    %9 = vector.broadcast %cst_6 : f32 to vector<32x128xf32>
    %10 = arith.addf %9, %8 : vector<32x128xf32>
    %11 = tpu.reciprocal %10 {approx = true} : vector<32x128xf32> -> vector<32x128xf32>
    %12 = arith.mulf %5, %11 : vector<32x128xf32>
    %c0_7 = arith.constant 0 : index
    %c0_8 = arith.constant 0 : index
    %13 = vector.load %arg4[%c0_7, %c0_8] : memref<32x128xf32, #tpu.memory_space<vmem>>, vector<32x128xf32>
    tpu.vector_store %arg4[%c0_7, %c0_8], %12 {strides = array<i32>} : memref<32x128xf32, #tpu.memory_space<vmem>>, vector<32x128xf32>,
    return
  }
  func.func @transform_0(%arg0: i32) -> (i32, i32) {
    %c0_i32 = arith.constant 0 : i32
    %c0_i32_0 = arith.constant 0 : i32
    return %arg0, %c0_i32 : i32, i32
  }
  func.func @transform_1(%arg0: i32) -> (i32, i32) {
    %c0_i32 = arith.constant 0 : i32
    %c0_i32_0 = arith.constant 0 : i32
    %c0_i32_1 = arith.constant 0 : i32
    return %c0_i32, %c0_i32_0 : i32, i32
  }
  func.func @transform_2(%arg0: i32) -> (i32, i32) {
    %c0_i32 = arith.constant 0 : i32
    %c0_i32_0 = arith.constant 0 : i32
    %c0_i32_1 = arith.constant 0 : i32
    return %c0_i32, %c0_i32_0 : i32, i32
  }
  func.func @transform_3(%arg0: i32) -> (i32, i32) {
    %c0_i32 = arith.constant 0 : i32
    %c0_i32_0 = arith.constant 0 : i32
    return %arg0, %c0_i32 : i32, i32
  }
}

</mosaic_0001>

<bundles_post_ra>
// kernel: tpu_custom_call.1
= control target key start
LH: loop header
LB: loop body
LE: loop exit
PB: predicated region body
PF: predicated region fallthrough
CT: control target
= control target key end

     0   :  { %8 = vsyncpa [#allocation3], 0  ;;  %s439_s0 = inlined_call_operand.hbm [shape: f32[32,64], index: 0, kind: input, shape index: {}]   ;;  %s440_s1 = inlined_call_operand.hbm [shape: f32[64,128], index: 1, kind: input, shape index: {}]   ;;  %s441_s2 = inlined_call_operand.vmem [shape: f32[1,128], index: 2, kind: input, shape index: {}]   ;;  %s442_s3 = inlined_call_operand.hbm [shape: f32[32,128], index: 3, kind: output, shape index: {}]  }
   0x1   :  { %9 = vsyncpa [#allocation6], 0 }
   0x2   :  { %10 = vsyncpa [#allocation4], 0  ;;  %s362_s12 = smov [#allocation2]   ;;  %s290_s16 = scalar_lea.hbm %s439_s0, 512 }
   0x3   :  { %s16_s13 = sshll.u32 %s362_s12, 4  ;;  %p291_p0 = scmp.ne.s32.totalorder %s439_s0, %s290_s16  ;;  %s17_s13 = int_to_ptr.vmem [resolvable:$true] %s16_s13 }
   0x4   :  { %p294_p1 = scmp.lt.u32.totalorder %s290_s16, %s439_s0 }
   0x6   :  { %p296_p2 = pnand %p294_p1, %p291_p0 }
   0x8   :  { %299 = shalt.err (!%p296_p2)
}
   0x9   :  { %s300_s21 = scalar_lea.vmem %s17_s13, 512  ;;  %p305_p4 = scmp.lt.s32.totalorder %s17_s13, %s17_s13 }
   0xa   :  { %p301_p3 = scmp.ne.s32.totalorder %s17_s13, %s300_s21  ;;  %p306_p5 = scmp.lt.s32.totalorder %s300_s21, %s300_s21 }
   0xc   :  { %p307_p6 = por %p306_p5, %p305_p4 }
   0xe   :  { %p308_p7 = pnand %p307_p6, %p301_p3 }
  0x10   :  { %311 = shalt.err (!%p308_p7)
}
  0x11   :  { %s363_s22 = smov 128   ;;  %s364_s23 = smov 8  }
  0x12   :  { %22 = dma.hbm_to_vmem [thread:$0]  %s439_s0, 512, %s17_s13, [#allocation3], %s363_s22, %s363_s22, %s364_s23  }
  0x13   :  { %s365_s26 = smov [#allocation5]   ;;  %s312_s30 = scalar_lea.hbm %s440_s1, 1024 }
  0x14   :  { %s28_s27 = sshll.u32 %s365_s26, 4  ;;  %p313_p8 = scmp.ne.s32.totalorder %s440_s1, %s312_s30  ;;  %s29_s27 = int_to_ptr.vmem [resolvable:$true] %s28_s27 }
  0x15   :  { %p316_p9 = scmp.lt.u32.totalorder %s312_s30, %s440_s1 }
  0x17   :  { %p318_p10 = pnand %p316_p9, %p313_p8 }
  0x19   :  { %321 = shalt.err (!%p318_p10)
}
  0x1a   :  { %s322_s8 = scalar_lea.vmem %s29_s27, 1024  ;;  %p327_p12 = scmp.lt.s32.totalorder %s29_s27, %s29_s27 }
  0x1b   :  { %p323_p11 = scmp.ne.s32.totalorder %s29_s27, %s322_s8  ;;  %p328_p13 = scmp.lt.s32.totalorder %s322_s8, %s322_s8 }
  0x1d   :  { %p329_p0 = por %p328_p13, %p327_p12 }
  0x1f   :  { %p330_p1 = pnand %p329_p0, %p323_p11 }
  0x21   :  { %333 = shalt.err (!%p330_p1)
}
  0x22   :  { %34 = dma.hbm_to_vmem [thread:$0]  %s440_s1, 1024, %s29_s27, [#allocation6], %s363_s22, %s363_s22, %s364_s23  }
  0x23   :  { %356 = dma.done.wait [#allocation3], 512  }
  0x24   :  { %357 = vsyncadd [#allocation3], 4294966784 }
  0x25   :  { %358 = dma.done.wait [#allocation6], 1024  }
  0x26   :  { %359 = vsyncadd [#allocation6], 4294966272  ;;  %v47_v0 = vld [vmem:[#allocation5] sm:$0xff]  ;;  %v48_v1 = vld [vmem:[#allocation5 + $0x8] sm:$0xff]  ;;  %vm62_vm0 = vcmask 523264  }
  0x27   :  { %v49_v2 = vld [vmem:[#allocation5 + $0x10] sm:$0xff]  ;;  %v245_v3 = vpack.c.bf16 %v48_v1, %v47_v0  ;;  %v50_v4 = vld [vmem:[#allocation5 + $0x18] sm:$0xff]  ;;  %v51_v6 = vld [vmem:[#allocation5 + $0x20] sm:$0xff] }
  0x28   :  { %v249_v5 = vpack.c.bf16 %v50_v4, %v49_v2  ;;  %v52_v7 = vld [vmem:[#allocation5 + $0x28] sm:$0xff]  ;;  %v43_v8 = vld [vmem:[#allocation2] sm:$0xff]  ;;  %v45_v9 = vld [vmem:[#allocation2 + $0x10] sm:$0xff] }
  0x29   :  { %246 = vmatprep.subr.bf16.mxu0 %v245_v3  ;;  %261 = vmatprep.subr.bf16.mxu1 %v245_v3  ;;  %v253_v10 = vpack.c.bf16 %v52_v7, %v51_v6  ;;  %v53_v11 = vld [vmem:[#allocation5 + $0x30] sm:$0xff]  ;;  %v54_v12 = vld [vmem:[#allocation5 + $0x38] sm:$0xff]  ;;  %v44_v14 = vld [vmem:[#allocation2 + $0x8] sm:$0xff] }
  0x2a   :  { %248 = vmatpush3.bf16.msra.mxu0 %v245_v3  ;;  %265 = vmatpush3.bf16.msra.mxu1 %v245_v3  ;;  %v257_v13 = vpack.c.bf16 %v54_v12, %v53_v11  ;;  %v46_v15 = vld [vmem:[#allocation2 + $0x18] sm:$0xff]  ;;  %v206_v16 = vld [vmem:[%s441_s2] ss:$0 sm:$0xff]  ;;  %s366_s2 = smov [#allocation7]  }
  0x2b   :  { %250 = vmatprep.subr.bf16.mxu0 %v249_v5  ;;  %262 = vmatprep.subr.bf16.mxu1 %v249_v5  ;;  %s193_s11 = sshll.u32 %s366_s2, 4  ;;  %s194_s11 = int_to_ptr.vmem [resolvable:$true] %s193_s11 }
  0x2c   :  { %239 = vmatprep.mubr.msk.f32.mxu0 %vm62_vm0, %v43_v8  ;;  %242 = vmatprep.mubr.msk.f32.mxu1 %vm62_vm0, %v45_v9  ;;  %s334_s12 = scalar_lea.vmem %s194_s11, 512  ;;  %p339_p3 = scmp.lt.s32.totalorder %s194_s11, %s194_s11 }
  0x2d   :  { %p335_p2 = scmp.ne.s32.totalorder %s194_s11, %s334_s12  ;;  %p340_p4 = scmp.lt.s32.totalorder %s334_s12, %s334_s12 }
  0x2e   :  { %252 = vmatpush3.bf16.msra.mxu0 %v249_v5  ;;  %266 = vmatpush3.bf16.msra.mxu1 %v249_v5 }
  0x2f   :  { %254 = vmatprep.subr.bf16.mxu0 %v253_v10  ;;  %263 = vmatprep.subr.bf16.mxu1 %v253_v10  ;;  %p341_p5 = por %p340_p4, %p339_p3 }
  0x31   :  { %p342_p6 = pnand %p341_p5, %p335_p2 }
  0x32   :  { %256 = vmatpush3.bf16.msra.mxu0 %v253_v10  ;;  %267 = vmatpush3.bf16.msra.mxu1 %v253_v10 }
  0x33   :  { %258 = vmatprep.subr.bf16.mxu0 %v257_v13  ;;  %264 = vmatprep.subr.bf16.mxu1 %v257_v13 }
  0x36   :  { %260 = vmatpush3.bf16.msra.mxu0 %v257_v13  ;;  %268 = vmatpush3.bf16.msra.mxu1 %v257_v13 }
  0x39   :  { %240 = vmatmul.mubr.msk.f32.vlgmr.msra.gmra.mrb[0].mxu0 %vm62_vm0, %v44_v14  ;;  %243 = vmatmul.mubr.msk.f32.vlgmr.msra.gmra.mrb[0].mxu1 %vm62_vm0, %v46_v15 }
 0x10c   :  { %v241_v17 = vpop.f32.mrb[0].mxu0  ;;  %v244_v18 = vpop.f32.mrb[0].mxu1 }
 0x10d   :  { %v147_v19 = vadd.f32 %v241_v17, %v206_v16  ;;  %v157_v20 = vadd.f32 %v244_v18, %v206_v16  ;;  %v141_v21 = vpop.f32.mrb[1].mxu0  ;;  %v151_v22 = vpop.f32.mrb[1].mxu1 }
 0x10e   :  { %v142_v23 = vadd.f32 %v206_v16, %v141_v21  ;;  %v152_v24 = vadd.f32 %v206_v16, %v151_v22 }
 0x10f   :  { %v161_v25 = vsub.f32 0.0, %v147_v19  ;;  %v163_v26 = vsub.f32 0.0, %v157_v20 }
 0x110   :  { %v160_v27 = vsub.f32 0.0, %v142_v23  ;;  %v162_v28 = vsub.f32 0.0, %v152_v24 }
 0x111   :  { %v166_v29 = vmul.f32 1.442695, %v161_v25  ;;  %v170_v30 = vmul.f32 1.442695, %v163_v26 }
 0x112   :  { %v164_v31 = vmul.f32 1.442695, %v160_v27  ;;  %v168_v32 = vmul.f32 1.442695, %v162_v28 }
 0x113   :  { %274 = vpow2.f32 %v166_v29 }
 0x114   :  { %276 = vpow2.f32 %v170_v30 }
 0x115   :  { %278 = vpow2.f32 %v164_v31 }
 0x116   :  { %280 = vpow2.f32 %v168_v32 }
 0x11d   :  { %v275_v33 = vpop.eup %274 }
 0x11e   :  { %v277_v34 = vpop.eup %276  ;;  %v173_v35 = vadd.f32 1.0, %v275_v33 }
 0x11f   :  { %v279_v36 = vpop.eup %278  ;;  %v175_v37 = vadd.f32 1.0, %v277_v34 }
 0x120   :  { %v281_v38 = vpop.eup %280  ;;  %282 = vrcp.f32 %v173_v35  ;;  %v172_v39 = vadd.f32 1.0, %v279_v36 }
 0x121   :  { %284 = vrcp.f32 %v175_v37  ;;  %v174_v40 = vadd.f32 1.0, %v281_v38 }
 0x122   :  { %286 = vrcp.f32 %v172_v39 }
 0x123   :  { %288 = vrcp.f32 %v174_v40 }
 0x12a   :  { %v283_v41 = vpop.eup %282 }
 0x12b   :  { %v285_v42 = vpop.eup %284  ;;  %v181_v43 = vmul.f32 %v283_v41, %v147_v19 }
 0x12c   :  { %v287_v44 = vpop.eup %286  ;;  %v183_v45 = vmul.f32 %v285_v42, %v157_v20 }
 0x12d   :  { %v289_v46 = vpop.eup %288  ;;  %185 = vst [vmem:[#allocation7 + $0x8] sm:$0xff] %v181_v43  ;;  %v180_v47 = vmul.f32 %v287_v44, %v142_v23 }
 0x12e   :  { %187 = vst [vmem:[#allocation7 + $0x18] sm:$0xff] %v183_v45  ;;  %v182_v48 = vmul.f32 %v289_v46, %v152_v24 }
 0x12f   :  { %184 = vst [vmem:[#allocation7] sm:$0xff] %v180_v47 }
 0x130   :  { %186 = vst [vmem:[#allocation7 + $0x10] sm:$0xff] %v182_v48 }
 0x131   :  { %345 = shalt.err (!%p342_p6)
}
 0x132   :  { %s346_s15 = scalar_lea.hbm %s442_s3, 512 }
 0x133   :  { %p347_p7 = scmp.ne.s32.totalorder %s442_s3, %s346_s15  ;;  %p350_p8 = scmp.lt.u32.totalorder %s346_s15, %s442_s3 }
 0x135   :  { %p352_p9 = pnand %p350_p8, %p347_p7 }
 0x137   :  { %355 = shalt.err (!%p352_p9)
}
 0x138   :  { %199 = dma.vmem_to_hbm [thread:$0]  %s194_s11, 512, %s442_s3, [#allocation4], %s363_s22, %s363_s22, %s364_s23  }
 0x139   :  { %360 = dma.done.wait [#allocation4], 512  }
 0x13a   :  { %361 = vsyncadd [#allocation4], 4294966784 }
 0x13b   :  { %203 = vsyncpa [#allocation3], 1 }
 0x13c   :  { %204 = vsyncpa [#allocation6], 1 }
 0x13d   :  { %205 = vsyncpa [#allocation4], 1 }

</bundles_post_ra>
